<compile_context>
chip_gen: v7x
topology: tpu7x:2x2x1
jax: 0.10.0
libtpu: 0.0.40
codegen_flags: <defaults>
</compile_context>

<pallas_src>
import functools

import jax
import jax.numpy as jnp
from jax.experimental import pallas as pl
from jax.experimental.pallas import tpu as pltpu


def _round_up(n, m):
    return -(-n // m) * m


def lstm_seq_kernel(wt_ref, b_ref, h0_ref, c0_ref, x_ref, out_ref,
                    h_scr, c_scr, *, dxp):
    """One grid step = one LSTM time step.

    wt_ref : (dxp + dhp, 4*dxp) bf16   packed/padded [f|i|C|o] weights (xh-major)
    b_ref  : (1, 4*dxp)          f32   packed/padded biases
    h0_ref : (Bp, dhp)           f32   initial hidden state
    c0_ref : (Bp, dxp)           f32   initial cell state
    x_ref  : (1, Bp, dxp)        bf16  this step's input
    out_ref: (1, Bp, 2*dxp)      f32   [h_t | c_t] packed, lane-dense
    h_scr/c_scr: VMEM scratch carrying the recurrence across grid steps.
    """
    t = pl.program_id(0)

    @pl.when(t == 0)
    def _():
        h_scr[...] = h0_ref[...]
        c_scr[...] = c0_ref[...]

    x = x_ref[0]                         # (Bp, dxp) bf16
    h = h_scr[...]                       # (Bp, dhp) f32
    cs = c_scr[...]                      # (Bp, dxp) f32

    # Single fused gate matmul on the MXU: (Bp, dxp+dhp) @ (dxp+dhp, 4*dxp).
    xh = jnp.concatenate([x, h.astype(jnp.bfloat16)], axis=1)
    z = jnp.dot(xh, wt_ref[...], preferred_element_type=jnp.float32) + b_ref[...]

    # Gate slices are 128-lane aligned (dxp is a multiple of 128).
    f_t = jax.nn.sigmoid(z[:, 0 * dxp:1 * dxp])
    i_t = jax.nn.sigmoid(z[:, 1 * dxp:2 * dxp])
    c_hat = jnp.tanh(z[:, 2 * dxp:3 * dxp])
    o_t = jax.nn.sigmoid(z[:, 3 * dxp:4 * dxp])

    c_t = f_t * cs + i_t * c_hat
    h_t = o_t * jnp.tanh(c_t)

    # Carry state in VMEM for the next grid step (padded lanes stay exactly 0).
    h_scr[...] = h_t
    c_scr[...] = c_t

    # Packed, lane-dense store: [h | c] in one 2*dxp-lane block.
    out_ref[0, :, 0:dxp] = h_t.astype(out_ref.dtype)
    out_ref[0, :, dxp:2 * dxp] = c_t.astype(out_ref.dtype)


def _pack_params(params, d_x, d_h, dxp, dhp):
    """Pack the 4 gate weights into one padded (dxp+dhp, 4*dxp) bf16 matrix
    (xh on rows, gates on lane-aligned column blocks) and biases into (1, 4*dxp).
    Column order [f, i, C, o] must match the slicing in the kernel."""
    wt = jnp.zeros((dxp + dhp, 4 * dxp), jnp.float32)
    b = jnp.zeros((1, 4 * dxp), jnp.float32)
    for g, (wn, bn) in enumerate(
            (("W_f", "B_f"), ("W_i", "B_i"), ("W_C", "B_C"), ("W_o", "B_o"))):
        w = params[wn].astype(jnp.float32)                    # (d_x, d_x + d_h)
        wt = wt.at[0:d_x, g * dxp:g * dxp + d_x].set(w[:, :d_x].T)
        wt = wt.at[dxp:dxp + d_h, g * dxp:g * dxp + d_x].set(w[:, d_x:].T)
        b = b.at[0, g * dxp:g * dxp + d_x].set(params[bn].astype(jnp.float32))
    return wt.astype(jnp.bfloat16), b


def _lstm_pallas(params, x_seq, h0, c0):
    """Core driver. x_seq: (T, B, D_x), h0: (B, D_h), c0: (B, D_x).
    Returns per-step (h, c), each (T, B, D_x)."""
    T, B, d_x = x_seq.shape
    d_h = h0.shape[-1]
    d = d_x + d_h
    assert c0.shape == (B, d_x)
    for k in ("W_f", "W_i", "W_C", "W_o"):
        assert params[k].shape == (d_x, d), f"{k} must be ({d_x}, {d})"
    for k in ("B_f", "B_i", "B_C", "B_o"):
        assert params[k].shape == (d_x,), f"{k} must be ({d_x},)"

    dxp = _round_up(max(d_x, 1), 128)
    dhp = _round_up(max(d_h, 1), 128)
    # The recurrent carry (h_scr <- h_t) needs matching padded widths.
    assert dxp == dhp, "padded D_x must equal padded D_h for the recurrent carry"
    Bp = _round_up(max(B, 1), 8)

    wt, b = _pack_params(params, d_x, d_h, dxp, dhp)

    xp = jnp.pad(x_seq.astype(jnp.bfloat16),
                 ((0, 0), (0, Bp - B), (0, dxp - d_x)))
    h0p = jnp.pad(h0.astype(jnp.float32), ((0, Bp - B), (0, dhp - d_h)))
    c0p = jnp.pad(c0.astype(jnp.float32), ((0, Bp - B), (0, dxp - d_x)))

    out = pl.pallas_call(
        functools.partial(lstm_seq_kernel, dxp=dxp),
        out_shape=jax.ShapeDtypeStruct((T, Bp, 2 * dxp), jnp.float32),
        grid=(T,),
        in_specs=[
            # Weights / bias / initial state: constant block index -> VMEM-resident,
            # DMA'd from HBM only once for the whole sequence.
            pl.BlockSpec((dxp + dhp, 4 * dxp), lambda t: (0, 0)),
            pl.BlockSpec((1, 4 * dxp), lambda t: (0, 0)),
            pl.BlockSpec((Bp, dhp), lambda t: (0, 0)),
            pl.BlockSpec((Bp, dxp), lambda t: (0, 0)),
            # Only x streams per time step.
            pl.BlockSpec((1, Bp, dxp), lambda t: (t, 0, 0)),
        ],
        out_specs=pl.BlockSpec((1, Bp, 2 * dxp), lambda t: (t, 0, 0)),
        scratch_shapes=[
            pltpu.VMEM((Bp, dhp), jnp.float32),   # h carry
            pltpu.VMEM((Bp, dxp), jnp.float32),   # c carry
        ],
        compiler_params=pltpu.CompilerParams(
            dimension_semantics=("arbitrary",)),  # time axis carries state
    )(wt, b, h0p, c0p, xp)

    h_all = out[:, :B, 0:d_x]
    c_all = out[:, :B, dxp:dxp + d_x]
    return h_all, c_all


def lstm_cell(params, x_t, h_s, C_s):
    """Single-step cell matching the PyTorch module.
    params: W_f/W_i/W_C/W_o (D_x, D_x+D_h) and B_f/B_i/B_C/B_o (D_x,).
    x_t: (D_x,), h_s: (D_h,), C_s: (D_x,). Returns (h_t, C_t), each (D_x,)."""
    h, c = _lstm_pallas(params, x_t[None, None, :], h_s[None, :], C_s[None, :])
    return h[0, 0], c[0, 0]


def lstm_sequence(params, x_seq, h0, c0):
    """Batched multi-step variant: x_seq (T, B, D_x), h0 (B, D_h), c0 (B, D_x).
    Runs the whole recurrence inside one pallas_call. Requires D_x == D_h."""
    return _lstm_pallas(params, x_seq, h0, c0)


# ----------------------------- references ----------------------------------

def lstm_cell_ref(params, x_t, h_s, C_s):
    xh = jnp.concatenate([x_t, h_s], axis=0)
    f = jax.nn.sigmoid(params["W_f"] @ xh + params["B_f"])
    i = jax.nn.sigmoid(params["W_i"] @ xh + params["B_i"])
    c_hat = jnp.tanh(params["W_C"] @ xh + params["B_C"])
    c_t = f * C_s + i * c_hat
    o = jax.nn.sigmoid(params["W_o"] @ xh + params["B_o"])
    return o * jnp.tanh(c_t), c_t


def lstm_seq_ref(params, x_seq, h0, c0):
    cell = jax.vmap(lstm_cell_ref, in_axes=(None, 0, 0, 0))
    h, c = h0, c0
    hs, cs = [], []
    for t in range(x_seq.shape[0]):
        h, c = cell(params, x_seq[t], h, c)
        hs.append(h)
        cs.append(c)
    return jnp.stack(hs), jnp.stack(cs)


if __name__ == "__main__":
    D_X, D_H = 32, 32
    D = D_X + D_H

    key = jax.random.PRNGKey(0)
    ks = jax.random.split(key, 14)
    params = {
        "W_f": jax.random.normal(ks[0], (D_X, D), jnp.float32) * 0.1,
        "W_i": jax.random.normal(ks[1], (D_X, D), jnp.float32) * 0.1,
        "W_C": jax.random.normal(ks[2], (D_X, D), jnp.float32) * 0.1,
        "W_o": jax.random.normal(ks[3], (D_X, D), jnp.float32) * 0.1,
        "B_f": jax.random.normal(ks[4], (D_X,), jnp.float32) * 0.1,
        "B_i": jax.random.normal(ks[5], (D_X,), jnp.float32) * 0.1,
        "B_C": jax.random.normal(ks[6], (D_X,), jnp.float32) * 0.1,
        "B_o": jax.random.normal(ks[7], (D_X,), jnp.float32) * 0.1,
    }

    # --- Single-step cell (exactly the module's forward) ---
    x_t = jax.random.normal(ks[8], (D_X,), jnp.float32)
    h_s = jax.random.normal(ks[9], (D_H,), jnp.float32)
    C_s = jax.random.normal(ks[10], (D_X,), jnp.float32)

    h_t, c_t = jax.jit(lstm_cell)(params, x_t, h_s, C_s)
    jax.block_until_ready((h_t, c_t))

    h_ref, c_ref = lstm_cell_ref(params, x_t, h_s, C_s)
    assert h_t.shape == (D_X,) and c_t.shape == (D_X,)
    # bf16 MXU inputs (f32 accumulate / f32 gate math) -> slightly wider tol.
    assert jnp.allclose(h_t, h_ref, atol=2e-2), "h_t mismatch"
    assert jnp.allclose(c_t, c_ref, atol=2e-2), "C_t mismatch"

    # --- Batched sequence: whole recurrence inside one pallas_call ---
    T, B = 4, 2
    x_seq = jax.random.normal(ks[11], (T, B, D_X), jnp.float32)
    h0 = jax.random.normal(ks[12], (B, D_H), jnp.float32)
    c0 = jax.random.normal(ks[13], (B, D_X), jnp.float32)

    h_all, c_all = jax.jit(lstm_sequence)(params, x_seq, h0, c0)
    jax.block_until_ready((h_all, c_all))

    h_all_ref, c_all_ref = lstm_seq_ref(params, x_seq, h0, c0)
    assert h_all.shape == (T, B, D_X) and c_all.shape == (T, B, D_X)
    assert jnp.allclose(h_all, h_all_ref, atol=5e-2), "sequence h mismatch"
    assert jnp.allclose(c_all, c_all_ref, atol=5e-2), "sequence C mismatch"

    print("KERNEL_OK")
</pallas_src>

<mosaic_0001>
module attributes {stable_mosaic.version = 11 : i64} {
  func.func @lstm_seq_kernel(%arg0: i32, %arg1: memref<256x512xbf16, #tpu.memory_space<vmem>>, %arg2: memref<1x512xf32, #tpu.memory_space<vmem>>, %arg3: memref<8x128xf32, #tpu.memory_space<vmem>>, %arg4: memref<8x128xf32, #tpu.memory_space<vmem>>, %arg5: memref<1x8x128xbf16, #tpu.memory_space<vmem>>, %arg6: memref<1x8x256xf32, #tpu.memory_space<vmem>>, %arg7: memref<8x128xf32, #tpu.memory_space<vmem>>, %arg8: memref<8x128xf32, #tpu.memory_space<vmem>>) attributes {dimension_semantics = [#tpu.dimension_semantics<arbitrary>], iteration_bounds = array<i64: 1>, scalar_prefetch = 0 : i64, scratch_operands = 2 : i64, tpu.core_type = #tpu.core_type<tc>, window_params = [{pipeline_mode = #tpu.pipeline_mode<synchronous>, transform_indices = @transform_0, window_bounds = array<i64: 256, 512>}, {pipeline_mode = #tpu.pipeline_mode<synchronous>, transform_indices = @transform_1, window_bounds = array<i64: 1, 512>}, {pipeline_mode = #tpu.pipeline_mode<synchronous>, transform_indices = @transform_2, window_bounds = array<i64: 8, 128>}, {pipeline_mode = #tpu.pipeline_mode<synchronous>, transform_indices = @transform_3, window_bounds = array<i64: 8, 128>}, {transform_indices = @transform_4, window_bounds = array<i64: 1, 8, 128>}, {transform_indices = @transform_5, window_bounds = array<i64: 1, 8, 256>}]} {
    %c0_i32 = arith.constant 0 : i32
    %0 = arith.cmpi eq, %arg0, %c0_i32 : i32
    %1 = arith.extui %0 : i1 to i32
    %c0_i32_0 = arith.constant 0 : i32
    %2 = arith.cmpi ne, %1, %c0_i32_0 : i32
    scf.if %2 {
      %c0_23 = arith.constant 0 : index
      %c0_24 = arith.constant 0 : index
      %47 = vector.load %arg3[%c0_23, %c0_24] : memref<8x128xf32, #tpu.memory_space<vmem>>, vector<8x128xf32>
      %c0_25 = arith.constant 0 : index
      %c0_26 = arith.constant 0 : index
      %48 = vector.load %arg7[%c0_25, %c0_26] : memref<8x128xf32, #tpu.memory_space<vmem>>, vector<8x128xf32>
      tpu.vector_store %arg7[%c0_25, %c0_26], %47 {strides = array<i32>} : memref<8x128xf32, #tpu.memory_space<vmem>>, vector<8x128xf32>,
      %c0_27 = arith.constant 0 : index
      %c0_28 = arith.constant 0 : index
      %49 = vector.load %arg4[%c0_27, %c0_28] : memref<8x128xf32, #tpu.memory_space<vmem>>, vector<8x128xf32>
      %c0_29 = arith.constant 0 : index
      %c0_30 = arith.constant 0 : index
      %50 = vector.load %arg8[%c0_29, %c0_30] : memref<8x128xf32, #tpu.memory_space<vmem>>, vector<8x128xf32>
      tpu.vector_store %arg8[%c0_29, %c0_30], %49 {strides = array<i32>} : memref<8x128xf32, #tpu.memory_space<vmem>>, vector<8x128xf32>,
    } else {
    }
    %c0 = arith.constant 0 : index
    %c0_1 = arith.constant 0 : index
    %c0_2 = arith.constant 0 : index
    %3 = vector.load %arg5[%c0, %c0_1, %c0_2] : memref<1x8x128xbf16, #tpu.memory_space<vmem>>, vector<1x8x128xbf16>
    %4 = vector.shape_cast %3 : vector<1x8x128xbf16> to vector<8x128xbf16>
    %c0_3 = arith.constant 0 : index
    %c0_4 = arith.constant 0 : index
    %5 = vector.load %arg7[%c0_3, %c0_4] : memref<8x128xf32, #tpu.memory_space<vmem>>, vector<8x128xf32>
    %c0_5 = arith.constant 0 : index
    %c0_6 = arith.constant 0 : index
    %6 = vector.load %arg8[%c0_5, %c0_6] : memref<8x128xf32, #tpu.memory_space<vmem>>, vector<8x128xf32>
    %7 = arith.truncf %5 : vector<8x128xf32> to vector<8x128xbf16>
    %8 = tpu.concatenate %4, %7 in 1 : vector<8x128xbf16>, vector<8x128xbf16> -> vector<8x256xbf16>
    %c0_7 = arith.constant 0 : index
    %c0_8 = arith.constant 0 : index
    %9 = vector.load %arg1[%c0_7, %c0_8] : memref<256x512xbf16, #tpu.memory_space<vmem>>, vector<256x512xbf16>
    %cst = arith.constant dense<0.000000e+00> : vector<8x512xf32>
    %10 = tpu.matmul %8, %9, %cst {dimension_numbers = #tpu.dot_dimension_numbers<[1], [0], [0], [1], [0, 0, 1, 1], [], []>} : vector<8x256xbf16>, vector<256x512xbf16>, vector<8x512xf32> -> vector<8x512xf32>
    %c0_9 = arith.constant 0 : index
    %c0_10 = arith.constant 0 : index
    %11 = vector.load %arg2[%c0_9, %c0_10] : memref<1x512xf32, #tpu.memory_space<vmem>>, vector<1x512xf32>
    %12 = vector.broadcast %11 : vector<1x512xf32> to vector<8x512xf32>
    %13 = arith.addf %10, %12 : vector<8x512xf32>
    %14 = vector.extract_strided_slice %13 {offsets = [0, 0], sizes = [8, 128], strides = [1, 1]} : vector<8x512xf32> to vector<8x128xf32>
    %15 = arith.negf %14 : vector<8x128xf32>
    %16 = math.exp %15 : vector<8x128xf32>
    %cst_11 = arith.constant 1.000000e+00 : f32
    %17 = vector.broadcast %cst_11 : f32 to vector<8x128xf32>
    %18 = arith.addf %17, %16 : vector<8x128xf32>
    %19 = arith.divf %17, %18 : vector<8x128xf32>
    %20 = vector.extract_strided_slice %13 {offsets = [0, 128], sizes = [8, 128], strides = [1, 1]} : vector<8x512xf32> to vector<8x128xf32>
    %21 = arith.negf %20 : vector<8x128xf32>
    %22 = math.exp %21 : vector<8x128xf32>
    %cst_12 = arith.constant 1.000000e+00 : f32
    %23 = vector.broadcast %cst_12 : f32 to vector<8x128xf32>
    %24 = arith.addf %23, %22 : vector<8x128xf32>
    %25 = arith.divf %23, %24 : vector<8x128xf32>
    %26 = vector.extract_strided_slice %13 {offsets = [0, 256], sizes = [8, 128], strides = [1, 1]} : vector<8x512xf32> to vector<8x128xf32>
    %27 = math.tanh %26 : vector<8x128xf32>
    %28 = vector.extract_strided_slice %13 {offsets = [0, 384], sizes = [8, 128], strides = [1, 1]} : vector<8x512xf32> to vector<8x128xf32>
    %29 = arith.negf %28 : vector<8x128xf32>
    %30 = math.exp %29 : vector<8x128xf32>
    %cst_13 = arith.constant 1.000000e+00 : f32
    %31 = vector.broadcast %cst_13 : f32 to vector<8x128xf32>
    %32 = arith.addf %31, %30 : vector<8x128xf32>
    %33 = arith.divf %31, %32 : vector<8x128xf32>
    %34 = arith.mulf %19, %6 : vector<8x128xf32>
    %35 = arith.mulf %25, %27 : vector<8x128xf32>
    %36 = arith.addf %34, %35 : vector<8x128xf32>
    %37 = math.tanh %36 : vector<8x128xf32>
    %38 = arith.mulf %33, %37 : vector<8x128xf32>
    %c0_14 = arith.constant 0 : index
    %c0_15 = arith.constant 0 : index
    %39 = vector.load %arg7[%c0_14, %c0_15] : memref<8x128xf32, #tpu.memory_space<vmem>>, vector<8x128xf32>
    tpu.vector_store %arg7[%c0_14, %c0_15], %38 {strides = array<i32>} : memref<8x128xf32, #tpu.memory_space<vmem>>, vector<8x128xf32>,
    %c0_16 = arith.constant 0 : index
    %c0_17 = arith.constant 0 : index
    %40 = vector.load %arg8[%c0_16, %c0_17] : memref<8x128xf32, #tpu.memory_space<vmem>>, vector<8x128xf32>
    tpu.vector_store %arg8[%c0_16, %c0_17], %36 {strides = array<i32>} : memref<8x128xf32, #tpu.memory_space<vmem>>, vector<8x128xf32>,
    %c0_18 = arith.constant 0 : index
    %c0_19 = arith.constant 0 : index
    %c0_20 = arith.constant 0 : index
    %41 = vector.load %arg6[%c0_18, %c0_19, %c0_20] : memref<1x8x256xf32, #tpu.memory_space<vmem>>, vector<1x8x128xf32>
    %42 = vector.shape_cast %41 : vector<1x8x128xf32> to vector<8x128xf32>
    %43 = vector.shape_cast %38 : vector<8x128xf32> to vector<1x8x128xf32>
    tpu.vector_store %arg6[%c0_18, %c0_19, %c0_20], %43 {strides = array<i32>} : memref<1x8x256xf32, #tpu.memory_space<vmem>>, vector<1x8x128xf32>,
    %c0_21 = arith.constant 0 : index
    %c0_22 = arith.constant 0 : index
    %c128 = arith.constant 128 : index
    %44 = vector.load %arg6[%c0_21, %c0_22, %c128] : memref<1x8x256xf32, #tpu.memory_space<vmem>>, vector<1x8x128xf32>
    %45 = vector.shape_cast %44 : vector<1x8x128xf32> to vector<8x128xf32>
    %46 = vector.shape_cast %36 : vector<8x128xf32> to vector<1x8x128xf32>
    tpu.vector_store %arg6[%c0_21, %c0_22, %c128], %46 {strides = array<i32>} : memref<1x8x256xf32, #tpu.memory_space<vmem>>, vector<1x8x128xf32>,
    return
  }
  func.func @transform_0(%arg0: i32) -> (i32, i32) {
    %c0_i32 = arith.constant 0 : i32
    %c0_i32_0 = arith.constant 0 : i32
    %c0_i32_1 = arith.constant 0 : i32
    return %c0_i32, %c0_i32_0 : i32, i32
  }
  func.func @transform_1(%arg0: i32) -> (i32, i32) {
    %c0_i32 = arith.constant 0 : i32
    %c0_i32_0 = arith.constant 0 : i32
    %c0_i32_1 = arith.constant 0 : i32
    return %c0_i32, %c0_i32_0 : i32, i32
  }
  func.func @transform_2(%arg0: i32) -> (i32, i32) {
    %c0_i32 = arith.constant 0 : i32
    %c0_i32_0 = arith.constant 0 : i32
    %c0_i32_1 = arith.constant 0 : i32
    return %c0_i32, %c0_i32_0 : i32, i32
  }
  func.func @transform_3(%arg0: i32) -> (i32, i32) {
    %c0_i32 = arith.constant 0 : i32
    %c0_i32_0 = arith.constant 0 : i32
    %c0_i32_1 = arith.constant 0 : i32
    return %c0_i32, %c0_i32_0 : i32, i32
  }
  func.func @transform_4(%arg0: i32) -> (i32, i32, i32) {
    %c0_i32 = arith.constant 0 : i32
    %c0_i32_0 = arith.constant 0 : i32
    %c0_i32_1 = arith.constant 0 : i32
    return %arg0, %c0_i32, %c0_i32_0 : i32, i32, i32
  }
  func.func @transform_5(%arg0: i32) -> (i32, i32, i32) {
    %c0_i32 = arith.constant 0 : i32
    %c0_i32_0 = arith.constant 0 : i32
    %c0_i32_1 = arith.constant 0 : i32
    return %arg0, %c0_i32, %c0_i32_0 : i32, i32, i32
  }
}

</mosaic_0001>

<bundles_post_ra>
// kernel: lstm_cell.1
= control target key start
LH: loop header
LB: loop body
LE: loop exit
PB: predicated region body
PF: predicated region fallthrough
CT: control target
= control target key end

     0   :  { %s971_s0 = inlined_call_operand.vmem [shape: bf16[256,512], index: 0, kind: input, shape index: {}]   ;;  %s972_s2 = inlined_call_operand.vmem [shape: f32[8,128], index: 2, kind: input, shape index: {}]   ;;  %s973_s4 = inlined_call_operand.vmem [shape: bf16[1,8,128], index: 4, kind: input, shape index: {}]   ;;  %s974_s1 = inlined_call_operand.vmem [shape: f32[1,512], index: 1, kind: input, shape index: {}]   ;;  %s975_s3 = inlined_call_operand.vmem [shape: f32[8,128], index: 3, kind: input, shape index: {}]   ;;  %s976_s5 = inlined_call_operand.vmem [shape: f32[1,8,256], index: 5, kind: output, shape index: {}]  }
   0x1   :  { %v619_v0 = vld [vmem:[%s971_s0 + $0x4] ss:$16 sps:$4 sm:$0xff]   ;;  %v621_v1 = vld [vmem:[%s971_s0] ss:$16 sps:$4 sm:$0xff]   ;;  %v630_v5 = vld [vmem:[%s971_s0 + $0xc] ss:$16 sps:$4 sm:$0xff]  }
   0x2   :  { %438 = vmatprep.subr.bf16.mxu0 %v619_v0  ;;  %v622_v2 = vld [vmem:[%s971_s0 + $0x24] ss:$16 sps:$4 sm:$0xff]   ;;  %v624_v3 = vld [vmem:[%s971_s0 + $0x20] ss:$16 sps:$4 sm:$0xff]   ;;  %v633_v6 = vld [vmem:[%s971_s0 + $0x8] ss:$16 sps:$4 sm:$0xff]   ;;  %479 = vmatprep.subr.bf16.mxu1 %v630_v5 }
   0x3   :  { %439 = vmatpush1.bf16.msra.mxu0 %v621_v1  ;;  %v625_v4 = vld [vmem:[%s971_s0 + $0x44] ss:$16 sps:$4 sm:$0xff]   ;;  %v627_v7 = vld [vmem:[%s971_s0 + $0x40] ss:$16 sps:$4 sm:$0xff]   ;;  %480 = vmatpush1.bf16.msra.mxu1 %v633_v6  ;;  %v636_v9 = vld [vmem:[%s971_s0 + $0x2c] ss:$16 sps:$4 sm:$0xff]  }
   0x4   :  { %440 = vmatprep.subr.bf16.mxu0 %v622_v2  ;;  %v628_v8 = vld [vmem:[%s971_s0 + $0x64] ss:$16 sps:$4 sm:$0xff]   ;;  %v639_v10 = vld [vmem:[%s971_s0 + $0x28] ss:$16 sps:$4 sm:$0xff]   ;;  %481 = vmatprep.subr.bf16.mxu1 %v636_v9  ;;  %v632_v11 = vld [vmem:[%s971_s0 + $0x60] ss:$16 sps:$4 sm:$0xff]  }
   0x5   :  { %v634_v12 = vld [vmem:[%s971_s0 + $0x84] ss:$16 sps:$4 sm:$0xff]   ;;  %v642_v13 = vld [vmem:[%s971_s0 + $0x4c] ss:$16 sps:$4 sm:$0xff]   ;;  %v645_v14 = vld [vmem:[%s971_s0 + $0x48] ss:$16 sps:$4 sm:$0xff]  }
   0x6   :  { %v648_v15 = vld [vmem:[%s971_s0 + $0x6c] ss:$16 sps:$4 sm:$0xff]   ;;  %v638_v16 = vld [vmem:[%s971_s0 + $0x80] ss:$16 sps:$4 sm:$0xff]   ;;  %v640_v17 = vld [vmem:[%s971_s0 + $0xa4] ss:$16 sps:$4 sm:$0xff]  }
   0x7   :  { %441 = vmatpush1.bf16.msra.mxu0 %v624_v3  ;;  %482 = vmatpush1.bf16.msra.mxu1 %v639_v10  ;;  %v651_v18 = vld [vmem:[%s971_s0 + $0x68] ss:$16 sps:$4 sm:$0xff]   ;;  %v654_v19 = vld [vmem:[%s971_s0 + $0x8c] ss:$16 sps:$4 sm:$0xff]   ;;  %v644_v20 = vld [vmem:[%s971_s0 + $0xa0] ss:$16 sps:$4 sm:$0xff]   ;;  %v98_v3 = vlaneseq }
   0x8   :  { %442 = vmatprep.subr.bf16.mxu0 %v625_v4  ;;  %483 = vmatprep.subr.bf16.mxu1 %v642_v13  ;;  %v646_v21 = vld [vmem:[%s971_s0 + $0xc4] ss:$16 sps:$4 sm:$0xff]   ;;  %v657_v22 = vld [vmem:[%s971_s0 + $0x88] ss:$16 sps:$4 sm:$0xff]   ;;  %v660_v23 = vld [vmem:[%s971_s0 + $0xac] ss:$16 sps:$4 sm:$0xff]  }
   0x9   :  { %v650_v24 = vld [vmem:[%s971_s0 + $0xc0] ss:$16 sps:$4 sm:$0xff]   ;;  %v652_v25 = vld [vmem:[%s971_s0 + $0xe4] ss:$16 sps:$4 sm:$0xff]   ;;  %v663_v26 = vld [vmem:[%s971_s0 + $0xa8] ss:$16 sps:$4 sm:$0xff]  }
   0xa   :  { %v666_v27 = vld [vmem:[%s971_s0 + $0xcc] ss:$16 sps:$4 sm:$0xff]   ;;  %v656_v28 = vld [vmem:[%s971_s0 + $0xe0] ss:$16 sps:$4 sm:$0xff]   ;;  %v658_v29 = vld [vmem:[%s971_s0 + $0x104] ss:$16 sps:$4 sm:$0xff]  }
   0xb   :  { %443 = vmatpush1.bf16.msra.mxu0 %v627_v7  ;;  %484 = vmatpush1.bf16.msra.mxu1 %v645_v14  ;;  %v669_v30 = vld [vmem:[%s971_s0 + $0xc8] ss:$16 sps:$4 sm:$0xff]   ;;  %v672_v31 = vld [vmem:[%s971_s0 + $0xec] ss:$16 sps:$4 sm:$0xff]   ;;  %v662_v32 = vld [vmem:[%s971_s0 + $0x100] ss:$16 sps:$4 sm:$0xff]  }
   0xc   :  { %444 = vmatprep.subr.bf16.mxu0 %v628_v8  ;;  %485 = vmatprep.subr.bf16.mxu1 %v648_v15  ;;  %v664_v33 = vld [vmem:[%s971_s0 + $0x124] ss:$16 sps:$4 sm:$0xff]   ;;  %v675_v34 = vld [vmem:[%s971_s0 + $0xe8] ss:$16 sps:$4 sm:$0xff]   ;;  %v678_v35 = vld [vmem:[%s971_s0 + $0x10c] ss:$16 sps:$4 sm:$0xff]  }
   0xd   :  { %v668_v36 = vld [vmem:[%s971_s0 + $0x120] ss:$16 sps:$4 sm:$0xff]   ;;  %v670_v37 = vld [vmem:[%s971_s0 + $0x144] ss:$16 sps:$4 sm:$0xff]   ;;  %v681_v38 = vld [vmem:[%s971_s0 + $0x108] ss:$16 sps:$4 sm:$0xff]  }
   0xe   :  { %v684_v39 = vld [vmem:[%s971_s0 + $0x12c] ss:$16 sps:$4 sm:$0xff]   ;;  %v24_v40 = vld [vmem:[%s972_s2] sm:$0xff]  ;;  %v687_v44 = vld [vmem:[%s971_s0 + $0x128] ss:$16 sps:$4 sm:$0xff]   ;;  %v99_v4 = vshrl.u32 %v98_v3, 7 }
   0xf   :  { %445 = vmatpush1.bf16.msra.mxu0 %v632_v11  ;;  %486 = vmatpush1.bf16.msra.mxu1 %v651_v18  ;;  %v674_v41 = vld [vmem:[%s971_s0 + $0x140] ss:$16 sps:$4 sm:$0xff]   ;;  %v31_v42 = vpack.c.bf16 %v24_v40, %v24_v40  ;;  %v676_v43 = vld [vmem:[%s971_s0 + $0x164] ss:$16 sps:$4 sm:$0xff]   ;;  %v690_v45 = vld [vmem:[%s971_s0 + $0x14c] ss:$16 sps:$4 sm:$0xff]  }
  0x10   :  { %446 = vmatprep.subr.bf16.mxu0 %v634_v12  ;;  %487 = vmatprep.subr.bf16.mxu1 %v654_v19  ;;  %v680_v46 = vld [vmem:[%s971_s0 + $0x160] ss:$16 sps:$4 sm:$0xff]   ;;  %v682_v47 = vld [vmem:[%s971_s0 + $0x184] ss:$16 sps:$4 sm:$0xff]   ;;  %v693_v48 = vld [vmem:[%s971_s0 + $0x148] ss:$16 sps:$4 sm:$0xff]  }
  0x11   :  { %470 = vmatprep.mubr.bf16.mxu0 %v31_v42  ;;  %511 = vmatprep.mubr.bf16.mxu1 %v31_v42  ;;  %v696_v49 = vld [vmem:[%s971_s0 + $0x16c] ss:$16 sps:$4 sm:$0xff]   ;;  %v686_v50 = vld [vmem:[%s971_s0 + $0x180] ss:$16 sps:$4 sm:$0xff]   ;;  %v688_v51 = vld [vmem:[%s971_s0 + $0x1a4] ss:$16 sps:$4 sm:$0xff]  }
  0x12   :  { %v699_v52 = vld [vmem:[%s971_s0 + $0x168] ss:$16 sps:$4 sm:$0xff]   ;;  %v702_v53 = vld [vmem:[%s971_s0 + $0x18c] ss:$16 sps:$4 sm:$0xff]   ;;  %v692_v54 = vld [vmem:[%s971_s0 + $0x1a0] ss:$16 sps:$4 sm:$0xff]  }
  0x13   :  { %447 = vmatpush1.bf16.msra.mxu0 %v638_v16  ;;  %488 = vmatpush1.bf16.msra.mxu1 %v657_v22  ;;  %v694_v55 = vld [vmem:[%s971_s0 + $0x1c4] ss:$16 sps:$4 sm:$0xff]   ;;  %v705_v56 = vld [vmem:[%s971_s0 + $0x188] ss:$16 sps:$4 sm:$0xff]   ;;  %v706_v57 = vld [vmem:[%s971_s0 + $0x1ac] ss:$16 sps:$4 sm:$0xff]  }
  0x14   :  { %448 = vmatprep.subr.bf16.mxu0 %v640_v17  ;;  %489 = vmatprep.subr.bf16.mxu1 %v660_v23  ;;  %v698_v58 = vld [vmem:[%s971_s0 + $0x1c0] ss:$16 sps:$4 sm:$0xff]   ;;  %v700_v59 = vld [vmem:[%s971_s0 + $0x1e4] ss:$16 sps:$4 sm:$0xff]   ;;  %v708_v60 = vld [vmem:[%s971_s0 + $0x1a8] ss:$16 sps:$4 sm:$0xff]  }
  0x15   :  { %v709_v61 = vld [vmem:[%s971_s0 + $0x1cc] ss:$16 sps:$4 sm:$0xff]   ;;  %v704_v62 = vld [vmem:[%s971_s0 + $0x1e0] ss:$16 sps:$4 sm:$0xff]   ;;  %v711_v63 = vld [vmem:[%s971_s0 + $0x1c8] ss:$16 sps:$4 sm:$0xff]  }
  0x16   :  { %v712_v0 = vld [vmem:[%s971_s0 + $0x1ec] ss:$16 sps:$4 sm:$0xff]   ;;  %v28_v1 = vld [vmem:[%s973_s4] sm:$0xf]  ;;  %v714_v2 = vld [vmem:[%s971_s0 + $0x1e8] ss:$16 sps:$4 sm:$0xff]  }
  0x17   :  { %449 = vmatpush1.bf16.msra.mxu0 %v644_v20  ;;  %490 = vmatpush1.bf16.msra.mxu1 %v663_v26  ;;  %v100_v5 = vsub.s32 0, %v99_v4  ;;  %v96_v6 = vld [vmem:[%s974_s1] sm:$0xf]  ;;  %v104_v7 = vsub.s32 1, %v99_v4  ;;  %v112_v10 = vsub.s32 3, %v99_v4  ;;  %v108_v20 = vsub.s32 2, %v99_v4 }
  0x18   :  { %450 = vmatprep.subr.bf16.mxu0 %v646_v21  ;;  %491 = vmatprep.subr.bf16.mxu1 %v666_v27 }
  0x19   :  { %v101_v8 = vrot.slane %v96_v6, %v100_v5  ;;  %v105_v9 = vrot.slane %v96_v6, %v104_v7  ;;  %v113_v18 = vrot.slane %v96_v6, %v112_v10  ;;  %v109_v26 = vrot.slane %v96_v6, %v108_v20 }
  0x1b   :  { %451 = vmatpush1.bf16.msra.mxu0 %v650_v24  ;;  %492 = vmatpush1.bf16.msra.mxu1 %v669_v30 }
  0x1c   :  { %452 = vmatprep.subr.bf16.mxu0 %v652_v25  ;;  %493 = vmatprep.subr.bf16.mxu1 %v672_v31 }
  0x1f   :  { %453 = vmatpush1.bf16.msra.mxu0 %v656_v28  ;;  %494 = vmatpush1.bf16.msra.mxu1 %v675_v34  ;;  %v26_v34 = vld [vmem:[%s975_s3] sm:$0xff] }
  0x20   :  { %454 = vmatprep.subr.bf16.mxu0 %v658_v29  ;;  %495 = vmatprep.subr.bf16.mxu1 %v678_v35 }
  0x23   :  { %455 = vmatpush1.bf16.msra.mxu0 %v662_v32  ;;  %496 = vmatpush1.bf16.msra.mxu1 %v681_v38 }
  0x24   :  { %456 = vmatprep.subr.bf16.mxu0 %v664_v33  ;;  %497 = vmatprep.subr.bf16.mxu1 %v684_v39 }
  0x27   :  { %457 = vmatpush1.bf16.msra.mxu0 %v668_v36  ;;  %498 = vmatpush1.bf16.msra.mxu1 %v687_v44 }
  0x28   :  { %458 = vmatprep.subr.bf16.mxu0 %v670_v37  ;;  %499 = vmatprep.subr.bf16.mxu1 %v690_v45 }
  0x2b   :  { %459 = vmatpush1.bf16.msra.mxu0 %v674_v41  ;;  %500 = vmatpush1.bf16.msra.mxu1 %v693_v48 }
  0x2c   :  { %460 = vmatprep.subr.bf16.mxu0 %v676_v43  ;;  %501 = vmatprep.subr.bf16.mxu1 %v696_v49 }
  0x2f   :  { %461 = vmatpush1.bf16.msra.mxu0 %v680_v46  ;;  %502 = vmatpush1.bf16.msra.mxu1 %v699_v52 }
  0x30   :  { %462 = vmatprep.subr.bf16.mxu0 %v682_v47  ;;  %503 = vmatprep.subr.bf16.mxu1 %v702_v53 }
  0x33   :  { %463 = vmatpush1.bf16.msra.mxu0 %v686_v50  ;;  %504 = vmatpush1.bf16.msra.mxu1 %v705_v56 }
  0x34   :  { %464 = vmatprep.subr.bf16.mxu0 %v688_v51  ;;  %505 = vmatprep.subr.bf16.mxu1 %v706_v57 }
  0x37   :  { %465 = vmatpush1.bf16.msra.mxu0 %v692_v54  ;;  %506 = vmatpush1.bf16.msra.mxu1 %v708_v60 }
  0x38   :  { %466 = vmatprep.subr.bf16.mxu0 %v694_v55  ;;  %507 = vmatprep.subr.bf16.mxu1 %v709_v61 }
  0x3b   :  { %467 = vmatpush1.bf16.msra.mxu0 %v698_v58  ;;  %508 = vmatpush1.bf16.msra.mxu1 %v711_v63 }
  0x3c   :  { %468 = vmatprep.subr.bf16.mxu0 %v700_v59  ;;  %509 = vmatprep.subr.bf16.mxu1 %v712_v0 }
  0x3f   :  { %469 = vmatpush1.bf16.msra.mxu0 %v704_v62  ;;  %510 = vmatpush1.bf16.msra.mxu1 %v714_v2 }
  0x42   :  { %471 = vmatmul.mubr.bf16.vlgmr.msra.gmra.mrb[0].mxu0 %v28_v1  ;;  %512 = vmatmul.mubr.bf16.vlgmr.msra.gmra.mrb[0].mxu1 %v28_v1 }
 0x115   :  { %v472_v11 = vpop.f32.mrb[0].mxu0  ;;  %v513_v21 = vpop.f32.mrb[0].mxu1 }
 0x116   :  { %v473_v12 = vadd.f32 %v472_v11, %v101_v8  ;;  %v474_v13 = vpop.f32.mrb[1].mxu0  ;;  %v515_v22 = vpop.f32.mrb[1].mxu1  ;;  %v514_v28 = vadd.f32 %v513_v21, %v109_v26 }
 0x117   :  { %v475_v14 = vadd.f32 %v474_v13, %v105_v9  ;;  %v476_v15 = vpop.f32.mrb[2].mxu0  ;;  %v516_v23 = vadd.f32 %v515_v22, %v113_v18  ;;  %v517_v24 = vpop.f32.mrb[2].mxu1 }
 0x118   :  { %v616_v16 = vmul.f32 -1.442695, %v473_v12  ;;  %v477_v17 = vpop.f32.mrb[3].mxu0  ;;  %v518_v25 = vpop.f32.mrb[3].mxu1 }
 0x119   :  { %v617_v19 = vmul.f32 -1.442695, %v475_v14  ;;  %v618_v27 = vmul.f32 -1.442695, %v516_v23 }
 0x11a   :  { %715 = vpow2.f32 %v616_v16 }
 0x11b   :  { %717 = vpow2.f32 %v617_v19 }
 0x11c   :  { %719 = vpow2.f32 %v618_v27 }
 0x11d   :  { %721 = vtanh.f32 %v514_v28 }
 0x124   :  { %v716_v29 = vpop.eup %715 }
 0x125   :  { %v718_v30 = vpop.eup %717  ;;  %v523_v31 = vadd.f32 1.0, %v716_v29 }
 0x126   :  { %v529_v32 = vadd.f32 1.0, %v718_v30  ;;  %v720_v33 = vpop.eup %719 }
 0x127   :  { %723 = vrcp.f32 %v523_v31  ;;  %v722_v35 = vpop.eup %721  ;;  %v536_v37 = vadd.f32 1.0, %v720_v33 }
 0x128   :  { %725 = vrcp.f32 %v529_v32 }
 0x129   :  { %727 = vrcp.f32 %v536_v37 }
 0x131   :  { %v724_v36 = vpop.eup %723 }
 0x132   :  { %v726_v38 = vpop.eup %725  ;;  %v539_v39 = vmul.f32 %v724_v36, %v26_v34 }
 0x133   :  { %v540_v40 = vmul.f32 %v726_v38, %v722_v35  ;;  %v728_v42 = vpop.eup %727 }
 0x135   :  { %v541_v41 = vadd.f32 %v540_v40, %v539_v39 }
 0x137   :  { %729 = vtanh.f32 %v541_v41  ;;  %547 = vst [vmem:[%s976_s5 + $0x8] sm:$0xff] %v541_v41 }
 0x141   :  { %v730_v43 = vpop.eup %729 }
 0x142   :  { %v543_v44 = vmul.f32 %v730_v43, %v728_v42 }
 0x144   :  { %546 = vst [vmem:[%s976_s5] sm:$0xff] %v543_v44 }

</bundles_post_ra>
